<compile_context>
chip_gen: v6e
topology: v6e:2x2x1
jax: 0.10.0
libtpu: 0.0.40
codegen_flags: <defaults>
</compile_context>

<pallas_src>
import functools

import jax
import jax.numpy as jnp
from jax.experimental import pallas as pl
from jax.experimental.pallas import tpu as pltpu


def _round_up(x: int, m: int) -> int:
    return (x + m - 1) // m * m


def _prototype_loss_kernel(logits_ref,     # (TB, Cp) input dtype, VMEM (auto-pipelined)
                           features_ref,   # (TB, Dp) input dtype, VMEM (auto-pipelined)
                           labels_ref,     # (TB, 1)  int32, VMEM
                           protos_ref,     # (Cp, Dp) input dtype, VMEM (resident, same block each step)
                           out_ref,        # (1, 2)   f32, SMEM: [ce_sum, sq_sum] for this tile
                           *, batch: int, block_b: int):
    tile = pl.program_id(0)
    row0 = tile * block_b

    logits = logits_ref[...].astype(jnp.float32)     # (TB, Cp)
    feats = features_ref[...].astype(jnp.float32)    # (TB, Dp)
    protos = protos_ref[...].astype(jnp.float32)     # (Cp, Dp)
    lbl_col = labels_ref[...]                        # (TB, 1) int32
    cp_dim = logits.shape[1]

    # Row-validity mask: padded batch rows contribute zero to both partial sums.
    row_iota = jax.lax.broadcasted_iota(jnp.int32, (block_b, 1), 0)     # (TB, 1)
    valid = ((row_iota + row0) < batch).astype(jnp.float32)             # (TB, 1)

    # One-hot of labels; reused for the CE target pick AND the MXU prototype gather.
    col_iota = jax.lax.broadcasted_iota(jnp.int32, (block_b, cp_dim), 1)
    one_hot = (col_iota == lbl_col).astype(jnp.float32)                 # (TB, Cp)

    # ---- cross-entropy partial sum (stable log-softmax; padded class cols ~finfo.min -> exp == 0) ----
    m = jnp.max(logits, axis=-1, keepdims=True)                         # (TB, 1)
    shifted = logits - m
    lse = jnp.log(jnp.sum(jnp.exp(shifted), axis=-1, keepdims=True))    # (TB, 1)
    picked = jnp.sum(one_hot * shifted, axis=-1, keepdims=True)         # (TB, 1)
    ce_sum = jnp.sum((lse - picked) * valid)

    # ---- prototype gather via one-hot MXU matmul, then squared-error partial sum ----
    gathered = jnp.dot(one_hot, protos, preferred_element_type=jnp.float32)   # (TB, Dp)
    diff = feats - gathered
    sq_sum = jnp.sum(jnp.sum(diff * diff, axis=-1, keepdims=True) * valid)

    # Per-tile partial sums; 1/B, 1/(B*D) and alpha scaling are folded in the wrapper.
    out_ref[0, 0] = ce_sum
    out_ref[0, 1] = sq_sum


def prototype_loss(logits, features, labels, prototypes, alpha=0.1, block_b=512):
    """CE(logits, labels) + alpha * mean((features - prototypes[labels])**2)."""
    B, C = logits.shape
    B2, D = features.shape
    assert B2 == B
    assert prototypes.shape == (C, D)

    Cp = _round_up(C, 128)
    Dp = _round_up(D, 128)

    l_is = logits.dtype.itemsize
    f_is = features.dtype.itemsize
    p_is = prototypes.dtype.itemsize

    # Tile selection: big batch tiles (HBM-bandwidth-bound kernel), but never larger than the
    # (8-rounded) batch, and shrunk until the VMEM estimate fits a v7x-safe budget.
    block_b = max(8, min(_round_up(block_b, 8), _round_up(B, 8)))

    def vmem_estimate(tb):
        in_bytes = 2 * tb * (Cp * l_is + Dp * f_is + 4)   # double-buffered input tiles
        proto_bytes = 2 * Cp * Dp * p_is                  # resident prototype table buffers
        interm = tb * (4 * Cp + 4 * Dp) * 4               # live f32 intermediates (one_hot, shifted, ...)
        return in_bytes + proto_bytes + interm

    VMEM_BUDGET = 44 * 1024 * 1024                        # v7x physical VMEM is 64 MiB; leave headroom
    while block_b > 8 and vmem_estimate(block_b) > VMEM_BUDGET:
        block_b = max(8, _round_up(block_b // 2, 8))

    Bp = _round_up(B, block_b)
    num_tiles = Bp // block_b

    # Pad only when necessary; keep the input dtypes (bf16 stays bf16 through the DMA).
    #  - padded class columns: dtype-aware very-negative finite fill (exp()==0, never picked)
    #  - padded feature / prototype columns: 0 (zero squared error)
    #  - padded batch rows: masked inside the kernel
    neg_fill = float(jnp.finfo(logits.dtype).min) / 2
    if Bp == B and Cp == C:
        logits_p = logits
    else:
        logits_p = jnp.full((Bp, Cp), neg_fill, logits.dtype).at[:B, :C].set(logits)
    if Bp == B and Dp == D:
        features_p = features
    else:
        features_p = jnp.zeros((Bp, Dp), features.dtype).at[:B, :D].set(features)
    if Cp == C and Dp == D:
        protos_p = prototypes
    else:
        protos_p = jnp.zeros((Cp, Dp), prototypes.dtype).at[:C, :D].set(prototypes)

    labels_c = jnp.clip(labels.astype(jnp.int32), 0, C - 1)   # guard against OOB gathers
    if Bp != B:
        labels_c = jnp.zeros((Bp,), jnp.int32).at[:B].set(labels_c)
    labels_p = labels_c.reshape(Bp, 1)

    vmem_limit = int(min(64 * 1024 * 1024,
                         max(32 * 1024 * 1024, 2 * vmem_estimate(block_b))))

    kernel = functools.partial(_prototype_loss_kernel, batch=B, block_b=block_b)
    partials = pl.pallas_call(
        kernel,
        out_shape=jax.ShapeDtypeStruct((num_tiles, 2), jnp.float32),
        grid_spec=pltpu.PrefetchScalarGridSpec(
            num_scalar_prefetch=0,
            grid=(num_tiles,),
            in_specs=[
                pl.BlockSpec((block_b, Cp), lambda i: (i, 0)),   # logits tile
                pl.BlockSpec((block_b, Dp), lambda i: (i, 0)),   # features tile
                pl.BlockSpec((block_b, 1), lambda i: (i, 0)),    # labels column
                pl.BlockSpec((Cp, Dp), lambda i: (0, 0)),        # prototype table (VMEM-resident)
            ],
            out_specs=pl.BlockSpec((1, 2), lambda i: (i, 0),
                                   memory_space=pltpu.MemorySpace.SMEM),
        ),
        compiler_params=pltpu.CompilerParams(
            dimension_semantics=("parallel",),                   # batch tiles shard across TCs (v7x)
            vmem_limit_bytes=vmem_limit,
        ),
    )(logits_p, features_p, labels_p, protos_p)

    ce_loss = jnp.sum(partials[:, 0]) / jnp.float32(B)
    proto_loss = jnp.sum(partials[:, 1]) / jnp.float32(B * D)
    return ce_loss + jnp.asarray(alpha, jnp.float32) * proto_loss


def _reference_loss(logits, features, labels, prototypes, alpha=0.1):
    logp = jax.nn.log_softmax(logits.astype(jnp.float32), axis=-1)
    ce = -jnp.mean(jnp.take_along_axis(logp, labels[:, None], axis=-1))
    proto = jnp.mean((features.astype(jnp.float32)
                      - prototypes.astype(jnp.float32)[labels]) ** 2)
    return ce + alpha * proto


if __name__ == "__main__":
    key = jax.random.PRNGKey(0)
    k1, k2, k3, k4 = jax.random.split(key, 4)

    # Small shapes consistent with the module; B=13 deliberately exercises batch padding/masking.
    B, C, D = 13, 10, 32
    logits = jax.random.normal(k1, (B, C), dtype=jnp.float32)
    features = jax.random.normal(k2, (B, D), dtype=jnp.float32)
    labels = jax.random.randint(k3, (B,), 0, C, dtype=jnp.int32)
    prototypes = jax.random.normal(k4, (C, D), dtype=jnp.float32)

    out = prototype_loss(logits, features, labels, prototypes, alpha=0.1)
    out = jax.block_until_ready(out)
    ref = _reference_loss(logits, features, labels, prototypes, alpha=0.1)
    assert jnp.allclose(out, ref, atol=1e-5, rtol=1e-5), (out, ref)

    # Multi-tile path: force several grid steps (block_b=16 -> 3 tiles) to exercise the
    # parallel grid axis, per-tile partials and the batch-row masking.
    B2 = 40
    k5, k6, k7 = jax.random.split(k4, 3)
    logits2 = jax.random.normal(k5, (B2, C), dtype=jnp.float32)
    features2 = jax.random.normal(k6, (B2, D), dtype=jnp.float32)
    labels2 = jax.random.randint(k7, (B2,), 0, C, dtype=jnp.int32)

    out2 = prototype_loss(logits2, features2, labels2, prototypes, alpha=0.1, block_b=16)
    out2 = jax.block_until_ready(out2)
    ref2 = _reference_loss(logits2, features2, labels2, prototypes, alpha=0.1)
    assert jnp.allclose(out2, ref2, atol=1e-5, rtol=1e-5), (out2, ref2)

    print("KERNEL_OK")
</pallas_src>

<mosaic_0001>
module attributes {stable_mosaic.version = 11 : i64} {
  func.func @_prototype_loss_kernel(%arg0: i32, %arg1: memref<16x128xf32, #tpu.memory_space<vmem>>, %arg2: memref<16x128xf32, #tpu.memory_space<vmem>>, %arg3: memref<16x1xi32, #tpu.memory_space<vmem>>, %arg4: memref<128x128xf32, #tpu.memory_space<vmem>>, %arg5: memref<1x2xf32, #tpu.memory_space<smem>>) attributes {dimension_semantics = [#tpu.dimension_semantics<parallel>], iteration_bounds = array<i64: 1>, scalar_prefetch = 0 : i64, scratch_operands = 0 : i64, tpu.core_type = #tpu.core_type<tc>, window_params = [{transform_indices = @transform_0, window_bounds = array<i64: 16, 128>}, {transform_indices = @transform_1, window_bounds = array<i64: 16, 128>}, {transform_indices = @transform_2, window_bounds = array<i64: 16, 1>}, {pipeline_mode = #tpu.pipeline_mode<synchronous>, transform_indices = @transform_3, window_bounds = array<i64: 128, 128>}, {transform_indices = @transform_4, window_bounds = array<i64: 1, 2>}]} {
    %c16_i32 = arith.constant 16 : i32
    %0 = arith.muli %arg0, %c16_i32 : i32
    %c0 = arith.constant 0 : index
    %c0_0 = arith.constant 0 : index
    %1 = vector.load %arg1[%c0, %c0_0] : memref<16x128xf32, #tpu.memory_space<vmem>>, vector<16x128xf32>
    %c0_1 = arith.constant 0 : index
    %c0_2 = arith.constant 0 : index
    %2 = vector.load %arg2[%c0_1, %c0_2] : memref<16x128xf32, #tpu.memory_space<vmem>>, vector<16x128xf32>
    %c0_3 = arith.constant 0 : index
    %c0_4 = arith.constant 0 : index
    %3 = vector.load %arg4[%c0_3, %c0_4] : memref<128x128xf32, #tpu.memory_space<vmem>>, vector<128x128xf32>
    %c0_5 = arith.constant 0 : index
    %c0_6 = arith.constant 0 : index
    %4 = vector.load %arg3[%c0_5, %c0_6] : memref<16x1xi32, #tpu.memory_space<vmem>>, vector<16x1xi32>
    %5 = tpu.iota {dimensions = array<i32: 0>} : vector<16x1xi32>
    %6 = vector.broadcast %0 : i32 to vector<16x1xi32>
    %7 = arith.addi %5, %6 : vector<16x1xi32>
    %c13_i32 = arith.constant 13 : i32
    %8 = vector.broadcast %c13_i32 : i32 to vector<16x1xi32>
    %9 = arith.cmpi slt, %7, %8 : vector<16x1xi32>
    %10 = arith.extui %9 : vector<16x1xi1> to vector<16x1xi32>
    %11 = arith.sitofp %10 : vector<16x1xi32> to vector<16x1xf32>
    %12 = tpu.iota {dimensions = array<i32: 1>} : vector<16x128xi32>
    %13 = vector.broadcast %4 : vector<16x1xi32> to vector<16x128xi32>
    %14 = arith.cmpi eq, %12, %13 : vector<16x128xi32>
    %15 = arith.extui %14 : vector<16x128xi1> to vector<16x128xi32>
    %16 = arith.sitofp %15 : vector<16x128xi32> to vector<16x128xf32>
    %cst = arith.constant dense<0xFF800000> : vector<16xf32>
    %17 = vector.multi_reduction <maximumf>, %1, %cst [1] : vector<16x128xf32> to vector<16xf32>
    %18 = vector.shape_cast %17 : vector<16xf32> to vector<16x1xf32>
    %19 = vector.broadcast %18 : vector<16x1xf32> to vector<16x128xf32>
    %20 = arith.subf %1, %19 : vector<16x128xf32>
    %21 = math.exp %20 : vector<16x128xf32>
    %cst_7 = arith.constant dense<0.000000e+00> : vector<16xf32>
    %22 = vector.multi_reduction <add>, %21, %cst_7 [1] : vector<16x128xf32> to vector<16xf32>
    %23 = vector.shape_cast %22 : vector<16xf32> to vector<16x1xf32>
    %24 = math.log %23 : vector<16x1xf32>
    %25 = arith.mulf %16, %20 : vector<16x128xf32>
    %cst_8 = arith.constant dense<0.000000e+00> : vector<16xf32>
    %26 = vector.multi_reduction <add>, %25, %cst_8 [1] : vector<16x128xf32> to vector<16xf32>
    %27 = vector.shape_cast %26 : vector<16xf32> to vector<16x1xf32>
    %28 = arith.subf %24, %27 : vector<16x1xf32>
    %29 = arith.mulf %28, %11 : vector<16x1xf32>
    %30 = vector.shape_cast %29 : vector<16x1xf32> to vector<1x16x1xf32>
    %cst_9 = arith.constant dense<0.000000e+00> : vector<1xf32>
    %31 = vector.multi_reduction <add>, %30, %cst_9 [1, 2] : vector<1x16x1xf32> to vector<1xf32>
    %32 = vector.shape_cast %31 : vector<1xf32> to vector<1x1x1xf32>
    %33 = vector.extract %32[0, 0, 0] : f32 from vector<1x1x1xf32>
    %cst_10 = arith.constant dense<0.000000e+00> : vector<16x128xf32>
    %34 = tpu.matmul %16, %3, %cst_10 {dimension_numbers = #tpu.dot_dimension_numbers<[1], [0], [0], [1], [0, 0, 1, 1], [], []>} : vector<16x128xf32>, vector<128x128xf32>, vector<16x128xf32> -> vector<16x128xf32>
    %35 = arith.subf %2, %34 : vector<16x128xf32>
    %36 = arith.mulf %35, %35 : vector<16x128xf32>
    %cst_11 = arith.constant dense<0.000000e+00> : vector<16xf32>
    %37 = vector.multi_reduction <add>, %36, %cst_11 [1] : vector<16x128xf32> to vector<16xf32>
    %38 = vector.shape_cast %37 : vector<16xf32> to vector<16x1xf32>
    %39 = arith.mulf %38, %11 : vector<16x1xf32>
    %40 = vector.shape_cast %39 : vector<16x1xf32> to vector<1x16x1xf32>
    %cst_12 = arith.constant dense<0.000000e+00> : vector<1xf32>
    %41 = vector.multi_reduction <add>, %40, %cst_12 [1, 2] : vector<1x16x1xf32> to vector<1xf32>
    %42 = vector.shape_cast %41 : vector<1xf32> to vector<1x1x1xf32>
    %43 = vector.extract %42[0, 0, 0] : f32 from vector<1x1x1xf32>
    %c0_13 = arith.constant 0 : index
    %c0_14 = arith.constant 0 : index
    %44 = memref.load %arg5[%c0_13, %c0_14] : memref<1x2xf32, #tpu.memory_space<smem>>
    memref.store %33, %arg5[%c0_13, %c0_14] : memref<1x2xf32, #tpu.memory_space<smem>>
    %c0_15 = arith.constant 0 : index
    %c1 = arith.constant 1 : index
    %45 = memref.load %arg5[%c0_15, %c1] : memref<1x2xf32, #tpu.memory_space<smem>>
    memref.store %43, %arg5[%c0_15, %c1] : memref<1x2xf32, #tpu.memory_space<smem>>
    return
  }
  func.func @transform_0(%arg0: i32) -> (i32, i32) {
    %c0_i32 = arith.constant 0 : i32
    %c0_i32_0 = arith.constant 0 : i32
    return %arg0, %c0_i32 : i32, i32
  }
  func.func @transform_1(%arg0: i32) -> (i32, i32) {
    %c0_i32 = arith.constant 0 : i32
    %c0_i32_0 = arith.constant 0 : i32
    return %arg0, %c0_i32 : i32, i32
  }
  func.func @transform_2(%arg0: i32) -> (i32, i32) {
    %c0_i32 = arith.constant 0 : i32
    %c0_i32_0 = arith.constant 0 : i32
    return %arg0, %c0_i32 : i32, i32
  }
  func.func @transform_3(%arg0: i32) -> (i32, i32) {
    %c0_i32 = arith.constant 0 : i32
    %c0_i32_0 = arith.constant 0 : i32
    %c0_i32_1 = arith.constant 0 : i32
    return %c0_i32, %c0_i32_0 : i32, i32
  }
  func.func @transform_4(%arg0: i32) -> (i32, i32) {
    %c0_i32 = arith.constant 0 : i32
    %c0_i32_0 = arith.constant 0 : i32
    return %arg0, %c0_i32 : i32, i32
  }
}

</mosaic_0001>

<bundles_post_ra>
// kernel: tpu_custom_call.1
= control target key start
LH: loop header
LB: loop body
LE: loop exit
PB: predicated region body
PF: predicated region fallthrough
CT: control target
= control target key end

     0   :  { %9 = vsyncpa [#allocation3], 0  ;;  %s449_s0 = inlined_call_operand.vmem [shape: f32[16,128], index: 0, kind: input, shape index: {}]   ;;  %s450_s1 = inlined_call_operand.hbm [shape: f32[16,128], index: 1, kind: input, shape index: {}]   ;;  %s451_s2 = inlined_call_operand.vmem [shape: s32[16,1], index: 2, kind: input, shape index: {}]   ;;  %s452_s3 = inlined_call_operand.hbm [shape: f32[128,128], index: 3, kind: input, shape index: {}]   ;;  %s453_s4 = inlined_call_operand.hbm [shape: f32[1,2], index: 4, kind: output, shape index: {}]  }
   0x1   :  { %10 = vsyncpa [#allocation6], 0 }
   0x2   :  { %11 = vsyncpa [#allocation4], 0  ;;  %s385_s15 = smov [#allocation2]  }
   0x3   :  { %s19_s16 = sshll.u32 %s385_s15, 4  ;;  %s20_s16 = int_to_ptr.vmem [resolvable:$true] %s19_s16 }
   0x4   :  { %s339_s17 = scalar_lea.vmem %s20_s16, 256  ;;  %p344_p1 = scmp.lt.s32.totalorder %s20_s16, %s20_s16 }
   0x5   :  { %p340_p0 = scmp.ne.s32.totalorder %s20_s16, %s339_s17  ;;  %p345_p2 = scmp.lt.s32.totalorder %s339_s17, %s339_s17 }
   0x7   :  { %p346_p3 = por %p345_p2, %p344_p1 }
   0x9   :  { %p347_p4 = pnand %p346_p3, %p340_p0 }
   0xb   :  { %350 = shalt.err (!%p347_p4)
}
   0xc   :  { %s386_s18 = smov 128   ;;  %s387_s19 = smov 8  }
   0xd   :  { %25 = dma.hbm_to_vmem [thread:$0]  %s450_s1, 256, %s20_s16, [#allocation3], %s386_s18, %s386_s18, %s387_s19  }
   0xe   :  { %s388_s22 = smov [#allocation5]  }
   0xf   :  { %s33_s23 = sshll.u32 %s388_s22, 4  ;;  %s34_s23 = int_to_ptr.vmem [resolvable:$true] %s33_s23 }
  0x10   :  { %s359_s24 = scalar_lea.vmem %s34_s23, 2048  ;;  %p364_p6 = scmp.lt.s32.totalorder %s34_s23, %s34_s23 }
  0x11   :  { %p360_p5 = scmp.ne.s32.totalorder %s34_s23, %s359_s24  ;;  %p365_p7 = scmp.lt.s32.totalorder %s359_s24, %s359_s24 }
  0x13   :  { %p366_p8 = por %p365_p7, %p364_p6 }
  0x15   :  { %p367_p9 = pnand %p366_p8, %p360_p5 }
  0x17   :  { %370 = shalt.err (!%p367_p9)
}
  0x18   :  { %39 = dma.hbm_to_vmem [thread:$0]  %s452_s3, 2048, %s34_s23, [#allocation6], %s386_s18, %s386_s18, %s387_s19  }
  0x19   :  { %379 = dma.done.wait [#allocation3], 256  }
  0x1a   :  { %380 = vsyncadd [#allocation3], 4294967040 }
  0x1b   :  { %381 = dma.done.wait [#allocation6], 2048  }
  0x1c   :  { %382 = vsyncadd [#allocation6], 4294965248  ;;  %v389_v0 = vmov 0   ;;  %v67_v1 = vld [vmem:[%s451_s2] sm:$0xff]  ;;  %v430_v2 = vld [vmem:[%s449_s0 + $0x8] sm:$0xff]  ;;  %v69_v21 = vlaneseq  ;;  %v390_v24 = vmov 1.0  }
  0x1d   :  { %322 = vset.pattern.permute.xlu0 %v389_v0  ;;  %97 = vmax.xlane.f32.xlu1 %v430_v2  ;;  %v66_v3 = vld [vmem:[#allocation5 + $0x78] sm:$0xff]  ;;  %v65_v4 = vld [vmem:[#allocation5 + $0x70] sm:$0xff]  ;;  %v64_v7 = vld [vmem:[#allocation5 + $0x68] sm:$0xff]  ;;  %v391_v34 = vmov 0.0   ;;  %vm123_vm3 = vcmask 7168   ;;  %s392_s7 = smov [#allocation7]  }
  0x1e   :  { %84 = vperm.xlu0 %322, %v67_v1   ;;  %v68_v5 = vld [vmem:[%s451_s2 + $0x8] sm:$0xff]  ;;  %v439_v6 = vld [vmem:[%s449_s0] sm:$0xff]  ;;  %275 = vmatprep.subr.mxu0 %v66_v3  ;;  %v63_v8 = vld [vmem:[#allocation5 + $0x60] sm:$0xff]  ;;  %v82_v22 = vand.u32 127, %v69_v21  ;;  %v70_v41 = vshrl.u32 %v69_v21, 7 }
  0x1f   :  { %276 = vmatpush3.msra.mxu0 %v66_v3  ;;  %v62_v9 = vld [vmem:[#allocation5 + $0x58] sm:$0xff]  ;;  %v61_v10 = vld [vmem:[#allocation5 + $0x50] sm:$0xff]  ;;  %v60_v11 = vld [vmem:[#allocation5 + $0x48] sm:$0xff] }
  0x20   :  { %277 = vmatprep.subr.mxu0 %v65_v4  ;;  %v59_v12 = vld [vmem:[#allocation5 + $0x40] sm:$0xff]  ;;  %v58_v13 = vld [vmem:[#allocation5 + $0x38] sm:$0xff]  ;;  %v57_v14 = vld [vmem:[#allocation5 + $0x30] sm:$0xff]  ;;  %v71_v43 = vadd.s32 8, %v70_v41 }
  0x21   :  { %95 = vmax.xlane.f32.xlu1 %v439_v6  ;;  %278 = vmatpush3.msra.mxu0 %v65_v4  ;;  %v56_v15 = vld [vmem:[#allocation5 + $0x28] sm:$0xff]  ;;  %v55_v16 = vld [vmem:[#allocation5 + $0x20] sm:$0xff]  ;;  %v54_v17 = vld [vmem:[#allocation5 + $0x18] sm:$0xff] }
  0x22   :  { %87 = vperm.xlu0 %322, %v68_v5   ;;  %279 = vmatprep.subr.mxu0 %v64_v7  ;;  %v53_v18 = vld [vmem:[#allocation5 + $0x10] sm:$0xff]  ;;  %v52_v19 = vld [vmem:[#allocation5 + $0x8] sm:$0xff]  ;;  %v51_v20 = vld [vmem:[#allocation5] sm:$0xff]  ;;  %vm76_vm2 = vcmp.lt.s32.totalorder %v71_v43, 13 }
  0x23   :  { %280 = vmatpush3.msra.mxu0 %v64_v7  ;;  %v50_v47 = vld [vmem:[#allocation2 + $0x8] sm:$0xff]  ;;  %v49_v50 = vld [vmem:[#allocation2] sm:$0xff]  ;;  %v252_v54 = vsel %vm76_vm2, 1.0, %v391_v34 }
  0x24   :  { %281 = vmatprep.subr.mxu0 %v63_v8 }
  0x25   :  { %282 = vmatpush3.msra.mxu0 %v63_v8 }
  0x26   :  { %283 = vmatprep.subr.mxu0 %v62_v9 }
  0x27   :  { %284 = vmatpush3.msra.mxu0 %v62_v9 }
  0x28   :  { %285 = vmatprep.subr.mxu0 %v61_v10 }
  0x29   :  { %286 = vmatpush3.msra.mxu0 %v61_v10 }
  0x2a   :  { %287 = vmatprep.subr.mxu0 %v60_v11 }
  0x2b   :  { %288 = vmatpush3.msra.mxu0 %v60_v11 }
  0x2c   :  { %289 = vmatprep.subr.mxu0 %v59_v12 }
  0x2d   :  { %290 = vmatpush3.msra.mxu0 %v59_v12 }
  0x2e   :  { %291 = vmatprep.subr.mxu0 %v58_v13 }
  0x2f   :  { %292 = vmatpush3.msra.mxu0 %v58_v13 }
  0x30   :  { %293 = vmatprep.subr.mxu0 %v57_v14 }
  0x31   :  { %294 = vmatpush3.msra.mxu0 %v57_v14 }
  0x32   :  { %295 = vmatprep.subr.mxu0 %v56_v15 }
  0x33   :  { %296 = vmatpush3.msra.mxu0 %v56_v15 }
  0x34   :  { %297 = vmatprep.subr.mxu0 %v55_v16 }
  0x35   :  { %298 = vmatpush3.msra.mxu0 %v55_v16 }
  0x36   :  { %299 = vmatprep.subr.mxu0 %v54_v17 }
  0x37   :  { %300 = vmatpush3.msra.mxu0 %v54_v17 }
  0x38   :  { %301 = vmatprep.subr.mxu0 %v53_v18 }
  0x39   :  { %302 = vmatpush3.msra.mxu0 %v53_v18 }
  0x3a   :  { %303 = vmatprep.subr.mxu0 %v52_v19 }
  0x3b   :  { %304 = vmatpush3.msra.mxu0 %v52_v19 }
  0x3c   :  { %305 = vmatprep.subr.mxu0 %v51_v20 }
  0x3d   :  { %306 = vmatpush3.msra.mxu0 %v51_v20 }
  0x99   :  { %v85_v23 = vpop.permute.xlu0 %84 }
  0x9a   :  { %vm89_vm0 = vcmp.eq.s32.totalorder %v82_v22, %v85_v23 }
  0x9b   :  { %307 = vmatprep.mubr.msk.f32.mxu0 %vm89_vm0, %v390_v24  ;;  %v253_v37 = vsel %vm89_vm0, 1.0, %v391_v34 }
  0x9d   :  { %v88_v25 = vpop.permute.xlu0 %87 }
  0x9e   :  { %vm90_vm1 = vcmp.eq.s32.totalorder %v82_v22, %v88_v25 }
  0x9f   :  { %308 = vmatmul.mubr.msk.f32.vlgmr.msra.gmra.mxu0 %vm90_vm1, %v390_v24  ;;  %v254_v35 = vsel %vm90_vm1, 1.0, %v391_v34 }
  0xa6   :  { %v98_v26 = vpop.xlane.xlu1 %97 }
  0xa7   :  { %v100_v27 = vsub.f32 %v430_v2, %v98_v26 }
  0xa9   :  { %v103_v28 = vmul.f32 1.442695, %v100_v27  ;;  %v114_v36 = vmul.f32 %v254_v35, %v100_v27 }
  0xaa   :  { %v96_v29 = vpop.xlane.xlu1 %95 }
  0xab   :  { %323 = vpow2.f32 %v103_v28  ;;  %v99_v30 = vsub.f32 %v439_v6, %v96_v29 }
  0xad   :  { %v101_v31 = vmul.f32 1.442695, %v99_v30  ;;  %v113_v38 = vmul.f32 %v253_v37, %v99_v30 }
  0xaf   :  { %325 = vpow2.f32 %v101_v31 }
  0xb8   :  { %v324_v32 = vpop.eup %323 }
  0xb9   :  { %107 = vadd.xlane.f32.xlu0 %v324_v32 }
  0xbc   :  { %v326_v33 = vpop.eup %325 }
  0xbd   :  { %105 = vadd.xlane.f32.xlu1 %v326_v33 }
  0xc1   :  { %117 = vadd.xlane.f32.xlu1 %v114_v36 }
  0xc5   :  { %115 = vadd.xlane.f32.xlu1 %v113_v38 }
 0x142   :  { %v108_v39 = vpop.xlane.xlu0 %107 }
 0x143   :  { %327 = vlog2.f32 %v108_v39 }
 0x146   :  { %v106_v40 = vpop.xlane.xlu1 %105 }
 0x147   :  { %329 = vlog2.f32 %v106_v40 }
 0x14a   :  { %v118_v45 = vpop.xlane.xlu1 %117 }
 0x14e   :  { %v116_v55 = vpop.xlane.xlu1 %115 }
 0x150   :  { %v328_v42 = vpop.eup %327 }
 0x151   :  { %v112_v46 = vmul.f32 0.6931472, %v328_v42 }
 0x153   :  { %v120_v52 = vsub.f32 %v112_v46, %v118_v45 }
 0x154   :  { %v330_v44 = vpop.eup %329 }
 0x155   :  { %v110_v48 = vmul.f32 0.6931472, %v330_v44  ;;  %v122_v59 = vmul.f32 %v252_v54, %v120_v52 }
 0x157   :  { %v119_v58 = vsub.f32 %v110_v48, %v116_v55  ;;  %v125_v62 = vsel %vm123_vm3, %v122_v59, 0.0 }
 0x159   :  { %v124_v61 = vsel %vm123_vm3, %v119_v58, 0.0 }
 0x15a   :  { %v126_v63 = vadd.f32 %v125_v62, %v124_v61 }
 0x15f   :  { %v309_v49 = vpop.f32.mrf.mxu0 }
 0x160   :  { %v212_v51 = vsub.f32 %v50_v47, %v309_v49 }
 0x161   :  { %v202_v53 = vpop.f32.mrf.mxu0 }
 0x162   :  { %v214_v56 = vmul.f32 %v212_v51, %v212_v51  ;;  %v211_v57 = vsub.f32 %v49_v50, %v202_v53 }
 0x164   :  { %217 = vadd.xlane.f32.xlu1 %v214_v56  ;;  %v213_v60 = vmul.f32 %v211_v57, %v211_v57 }
 0x168   :  { %215 = vadd.xlane.f32.xlu1 %v213_v60 }
 0x16c   :  { %127 = vadd.xlane.f32.xlu1 %v126_v63 }
 0x1ed   :  { %v218_v0 = vpop.xlane.xlu1 %217 }
 0x1ee   :  { %v220_v1 = vmul.f32 %v252_v54, %v218_v0 }
 0x1f0   :  { %v222_v4 = vsel %vm123_vm3, %v220_v1, 0.0 }
 0x1f1   :  { %v216_v2 = vpop.xlane.xlu1 %215 }
 0x1f2   :  { %v221_v3 = vsel %vm123_vm3, %v216_v2, 0.0 }
 0x1f3   :  { %v223_v5 = vadd.f32 %v222_v4, %v221_v3 }
 0x1f5   :  { %224 = vadd.xlane.f32.xlu1 %v223_v5  ;;  %v128_v6 = vpop.xlane.xlu1 %127 }
 0x1f6   :  { %v129_v7 = vrot.slane %v128_v6, 4 }
 0x1f8   :  { %v130_v8 = vadd.f32 %v129_v7, %v128_v6 }
 0x1fa   :  { %v131_v9 = vrot.slane %v130_v8, 2 }
 0x1fc   :  { %v132_v10 = vadd.f32 %v131_v9, %v130_v8 }
 0x1fe   :  { %v133_v11 = vrot.slane %v132_v10, 1 }
 0x200   :  { %v134_v12 = vadd.f32 %v133_v11, %v132_v10 }
 0x202   :  { %310 = vpush %v134_v12 }
 0x233   :  { %s311_s0 = spop %310 }
 0x234   :  { %234 = sst [smem:[#allocation7]] %s311_s0 }
 0x27e   :  { %v225_v13 = vpop.xlane.xlu1 %224 }
 0x27f   :  { %v226_v14 = vrot.slane %v225_v13, 4 }
 0x281   :  { %v227_v15 = vadd.f32 %v226_v14, %v225_v13 }
 0x283   :  { %v228_v16 = vrot.slane %v227_v15, 2 }
 0x285   :  { %v229_v17 = vadd.f32 %v228_v16, %v227_v15 }
 0x287   :  { %v230_v18 = vrot.slane %v229_v17, 1 }
 0x289   :  { %v231_v19 = vadd.f32 %v230_v18, %v229_v17 }
 0x28b   :  { %312 = vpush %v231_v19 }
 0x2bc   :  { %s313_s2 = spop %312 }
 0x2bd   :  { %236 = sst [smem:[#allocation7 + $0x1]] %s313_s2 }
 0x2be   :  { %244 = dma.smem_to_hbm %s392_s7, 16, %s453_s4, [#allocation4]  }
 0x2bf   :  { %383 = dma.done.wait [#allocation4], 16  }
 0x2c0   :  { %384 = vsyncadd [#allocation4], 4294967280 }
 0x2c1   :  { %248 = sfence }
 0x2c2   :  { %249 = vsyncpa [#allocation3], 1 }
 0x2c3   :  { %250 = vsyncpa [#allocation6], 1 }
 0x2c4   :  { %251 = vsyncpa [#allocation4], 1 }

</bundles_post_ra>
